<compile_context>
chip_gen: v5e
topology: v5e:2x2
jax: 0.10.0
libtpu: 0.0.40
codegen_flags: <defaults>
</compile_context>

<pallas_src>
import functools

import jax
import jax.numpy as jnp
from jax import lax
from jax.experimental import pallas as pl
from jax.experimental.pallas import tpu as pltpu


CHUNK_MAX = 16    # dilated timesteps processed per grid iteration (static unroll)


# -----------------------------------------------------------------------------
# Pallas LSTM recurrence kernel (serial hot path only: h @ W_hh^T + cell update)
# -----------------------------------------------------------------------------
def _lstm_chunk_kernel(xp_ref, whh_ref, out_ref, hn_ref, cn_ref,
                       h_scr, c_scr, *, hidden, chunk, dsteps, mask_tail):
    """One (direction, time-chunk) grid step of the dilated LSTM recurrence.

    xp_ref : (1, chunk, Bd, 4H) f32   hoisted x@W_ih^T + (b_ih+b_hh), cols [i,f,o,g]
    whh_ref: (1, H, 4H)        bf16   recurrent weights, transposed, cols [i,f,o,g]
    out_ref: (1, chunk, Bd, H) f32    hidden outputs for this chunk (one HBM slab)
    hn_ref : (1, Bd, H)        f32    final h (written on the last chunk only)
    cn_ref : (1, Bd, H)        f32    final c (written on the last chunk only)
    h_scr, c_scr: (Bd, H) f32         carries, persist across time chunks
    """
    tb = pl.program_id(1)

    @pl.when(tb == 0)
    def _():
        h_scr[...] = jnp.zeros_like(h_scr)
        c_scr[...] = jnp.zeros_like(c_scr)

    H = hidden
    whh = whh_ref[0]          # (H, 4H) bf16 — loaded once per chunk, not per step
    h = h_scr[...]
    c = c_scr[...]

    # Static unroll over the chunk: h/c live in vregs, all VMEM offsets are
    # static, one small MXU matmul + one sigmoid + two tanh launches per step.
    for s in range(chunk):
        gates = xp_ref[0, s] + jnp.dot(
            h.astype(whh.dtype), whh, preferred_element_type=jnp.float32)
        ifo = jax.nn.sigmoid(gates[:, :3 * H])   # columns pre-permuted to [i,f,o|g]
        g_g = jnp.tanh(gates[:, 3 * H:])
        c_new = ifo[:, H:2 * H] * c + ifo[:, :H] * g_g
        h_new = ifo[:, 2 * H:] * jnp.tanh(c_new)
        if mask_tail:
            # Freeze the carry on chunk-padding steps beyond the true dilated
            # length so h_n / c_n match the un-padded recurrence exactly.
            valid = tb * chunk + s < dsteps
            h_new = jnp.where(valid, h_new, h)
            c_new = jnp.where(valid, c_new, c)
        out_ref[0, s] = h_new            # store into the block-resident VMEM slab
        h, c = h_new, c_new

    h_scr[...] = h
    c_scr[...] = c

    @pl.when(tb == pl.num_programs(1) - 1)
    def _():
        hn_ref[0] = h
        cn_ref[0] = c


def dilated_lstm_pallas(xs, wih_t, whh_t, bias, rate, *, chunk_max=CHUNK_MAX):
    """Direction-batched dilated single-layer LSTM.

    xs    : (D, T, B, In) f32  time-major inputs, one row per direction
    wih_t : (D, In, 4H)   f32  input weights, transposed, gate cols [i, f, o, g]
    whh_t : (D, H, 4H)    bf16 recurrent weights, transposed, gate cols [i, f, o, g]
    bias  : (D, 4H)       f32  b_ih + b_hh, gate cols [i, f, o, g]
    Returns out:(D, T, B, H) f32, h_n:(D, B*rate, H) f32, c_n:(D, B*rate, H) f32.
    """
    D, T, B, In = xs.shape
    H = whh_t.shape[1]
    G = 4 * H

    # --- DRNN "pad": pad T up to a multiple of rate with zero *inputs*
    # (matching torch: padded steps see gates = bias + h @ W_hh and flow into h_n).
    dsteps = -(-T // rate)
    t_pad = dsteps * rate
    if t_pad != T:
        xs = jnp.concatenate(
            [xs, jnp.zeros((D, t_pad - T, B, In), xs.dtype)], axis=1)

    # --- Hoisted input projection: one large bf16 matmul, f32 accumulation,
    # bias folded in.  Removes half the MXU work + bias broadcast from the
    # serial per-step recurrence.
    x_proj = jnp.einsum(
        "dtbi,dig->dtbg",
        xs.astype(jnp.bfloat16), wih_t.astype(jnp.bfloat16),
        preferred_element_type=jnp.float32) + bias[:, None, None, :]

    # --- DRNN "prepare_inputs" is a FREE contiguous reshape (no gather):
    # dilated batch row j*B + b at dilated step s holds original time s*rate + j,
    # exactly torch.cat([x[j::rate] for j in range(rate)], dim=1).
    Bd = rate * B
    x_proj = x_proj.reshape(D, dsteps, Bd, G)

    chunk = min(chunk_max, dsteps)
    n_chunks = -(-dsteps // chunk)
    dsteps_pad = n_chunks * chunk
    if dsteps_pad != dsteps:
        x_proj = jnp.concatenate(
            [x_proj,
             jnp.zeros((D, dsteps_pad - dsteps, Bd, G), x_proj.dtype)], axis=1)

    kernel = functools.partial(
        _lstm_chunk_kernel, hidden=H, chunk=chunk, dsteps=dsteps,
        mask_tail=(dsteps_pad != dsteps))

    out, h_n, c_n = pl.pallas_call(
        kernel,
        out_shape=(
            jax.ShapeDtypeStruct((D, dsteps_pad, Bd, H), jnp.float32),
            jax.ShapeDtypeStruct((D, Bd, H), jnp.float32),
            jax.ShapeDtypeStruct((D, Bd, H), jnp.float32),
        ),
        grid_spec=pltpu.PrefetchScalarGridSpec(
            num_scalar_prefetch=0,
            grid=(D, n_chunks),
            in_specs=[
                pl.BlockSpec((1, chunk, Bd, G), lambda d, t: (d, t, 0, 0)),
                pl.BlockSpec((1, H, G), lambda d, t: (d, 0, 0)),
            ],
            out_specs=(
                pl.BlockSpec((1, chunk, Bd, H), lambda d, t: (d, t, 0, 0)),
                pl.BlockSpec((1, Bd, H), lambda d, t: (d, 0, 0)),
                pl.BlockSpec((1, Bd, H), lambda d, t: (d, 0, 0)),
            ),
            scratch_shapes=[
                pltpu.VMEM((Bd, H), jnp.float32),   # h carry
                pltpu.VMEM((Bd, H), jnp.float32),   # c carry
            ],
        ),
        # direction axis is independent (2 TCs on v7x); time carries the recurrence
        compiler_params=pltpu.CompilerParams(
            dimension_semantics=("parallel", "arbitrary")),
    )(x_proj, whh_t)

    # --- DRNN "split_outputs" + unpad: again free contiguous reshapes/slices.
    full = out[:, :dsteps].reshape(D, dsteps * rate, B, H)[:, :T]
    return full, h_n, c_n


# -----------------------------------------------------------------------------
# Weight preparation (gate permutation, transpose, bias fusion, direction stack)
# -----------------------------------------------------------------------------
def _gate_perm(hidden):
    """Permutation taking PyTorch gate order [i, f, g, o] -> [i, f, o, g]."""
    H = hidden
    return jnp.concatenate(
        [jnp.arange(0, 2 * H), jnp.arange(3 * H, 4 * H), jnp.arange(2 * H, 3 * H)])


def prepare_drnn_params(drnns_raw):
    """Stack per-direction torch-layout LSTM params into per-layer, direction-
    batched, kernel-ready params."""
    n_layers = len(drnns_raw[0])
    layers = []
    for li in range(n_layers):
        wih = jnp.stack([d[li]["w_ih"] for d in drnns_raw])                 # (D, 4H, In)
        whh = jnp.stack([d[li]["w_hh"] for d in drnns_raw])                 # (D, 4H, H)
        b = jnp.stack([d[li]["b_ih"] + d[li]["b_hh"] for d in drnns_raw])   # (D, 4H)
        H = whh.shape[-1]
        perm = _gate_perm(H)
        layers.append({
            "wih_t": jnp.transpose(wih[:, perm, :], (0, 2, 1)),                       # (D, In, 4H) f32
            "whh_t": jnp.transpose(whh[:, perm, :], (0, 2, 1)).astype(jnp.bfloat16),  # (D, H, 4H) bf16
            "bias": b[:, perm],                                                       # (D, 4H) f32
        })
    return layers


# -----------------------------------------------------------------------------
# DRNN (dilated RNN) and Encoder forward
# -----------------------------------------------------------------------------
def drnn_forward(xs, layers, num_layers):
    """Direction-batched DRNN.  xs: (D, T, B, F)."""
    # TODO(synk): enc_rnn_dropout is a no-op here (eval semantics, single-layer cells).
    all_outputs, h0s, h1s = [], [], []
    inp = xs
    for li in range(num_layers):
        rate = 2 ** li
        p = layers[li]
        out, h_n, c_n = dilated_lstm_pallas(inp, p["wih_t"], p["whh_t"], p["bias"], rate)
        all_outputs.append(out)     # (D, T, B, H)
        h0s.append(h_n)             # (D, B*rate, H)
        h1s.append(c_n)             # (D, B*rate, H)
        inp = out
    return inp, (h0s, h1s), all_outputs


def encoder_forward(params, config, x, x_emb, x_cal_emb):
    B = x.shape[0]
    H = config["rnn_num_hidden"]
    L = config["rnn_num_layers"]
    bidir = bool(config["bidirectional"])

    # permute(1, 0, 2): batch-first -> time-major
    x_t = jnp.transpose(x, (1, 0, 2))
    x_emb_t = jnp.transpose(x_emb, (1, 0, 2))
    x_cal_t = jnp.transpose(x_cal_emb, (1, 0, 2))

    emb_outs = [jnp.take(tbl, x_emb_t[:, :, i], axis=0)
                for i, tbl in enumerate(params["embeddings"])]
    output_emb = jnp.concatenate(emb_outs, axis=2)

    cal_tbl = params["cal_embedding"]
    output_emb_cal = jnp.concatenate(
        [jnp.take(cal_tbl, x_cal_t[:, :, 0], axis=0),
         jnp.take(cal_tbl, x_cal_t[:, :, 1], axis=0)], axis=2)

    x_rnn = jnp.concatenate([x_t, output_emb, output_emb_cal], axis=2)

    # Both directions run inside a single pallas_call per layer (leading grid axis).
    if bidir:
        xs = jnp.stack([x_rnn, jnp.flip(x_rnn, axis=0)], axis=0)   # (2, T, B, F)
    else:
        xs = x_rnn[None]

    layers = prepare_drnn_params(params["drnns"])
    _, (h0s, h1s), all_outputs = drnn_forward(xs, layers, L)

    n_dir = xs.shape[0]
    # h.view(-1, batch_size, hidden): (B*rate, H) -> (rate, B, H)
    drnn_h0 = [[h0s[i][d].reshape(-1, B, H) for i in range(L)] for d in range(n_dir)]
    drnn_h1 = [[h1s[i][d].reshape(-1, B, H) for i in range(L)] for d in range(n_dir)]
    drnn_outputs_per_dir = [[all_outputs[i][d] for i in range(L)] for d in range(n_dir)]

    drnn_hiddens = [drnn_h0, drnn_h1]
    if bidir:
        drnn_hiddens = [
            [jnp.stack([dh[0][i], dh[1][i]], axis=3) for i in range(L)]
            for dh in drnn_hiddens]
        # TODO(synk): mirrors the Encoder code literally — backward-direction
        # outputs are concatenated without a time flip (DRNN internals not in spec).
        drnn_outputs = [
            jnp.concatenate(
                [drnn_outputs_per_dir[0][i], drnn_outputs_per_dir[1][i]], axis=2)
            for i in range(L)]
    else:
        drnn_hiddens = [drnn_hiddens[0][0], drnn_hiddens[1][0]]
        drnn_outputs = drnn_outputs_per_dir[0]
    return drnn_outputs, drnn_hiddens


# -----------------------------------------------------------------------------
# Deterministic parameter construction (torch nn.LSTM layout)
# -----------------------------------------------------------------------------
def make_params(key, input_size, embedding_sizes, cal_embedding_sizes, config):
    H = config["rnn_num_hidden"]
    L = config["rnn_num_layers"]
    n_drnn = config["bidirectional"] + 1
    scale = 1.0 / jnp.sqrt(jnp.float32(H))

    keys = iter(jax.random.split(key, 64))
    params = {
        "embeddings": [jax.random.normal(next(keys), (c, d), jnp.float32)
                       for (c, d) in embedding_sizes],
        "cal_embedding": jax.random.normal(
            next(keys), (cal_embedding_sizes[0], cal_embedding_sizes[1]), jnp.float32),
        "drnns": [],
    }
    for _ in range(n_drnn):
        layers = []
        for li in range(L):
            in_dim = input_size if li == 0 else H
            layers.append({
                "w_ih": jax.random.uniform(next(keys), (4 * H, in_dim),
                                           jnp.float32, -scale, scale),
                "w_hh": jax.random.uniform(next(keys), (4 * H, H),
                                           jnp.float32, -scale, scale),
                "b_ih": jax.random.uniform(next(keys), (4 * H,),
                                           jnp.float32, -scale, scale),
                "b_hh": jax.random.uniform(next(keys), (4 * H,),
                                           jnp.float32, -scale, scale),
            })
        params["drnns"].append(layers)
    return params


# Pure-JAX reference LSTM (PyTorch gate order i,f,g,o); matmul_dtype lets us
# mirror the kernel's bf16-operand / f32-accumulation policy for tight checks.
def _lstm_ref(x_seq, w_ih, w_hh, b_ih, b_hh, matmul_dtype=jnp.float32):
    H = w_hh.shape[1]
    Bd = x_seq.shape[1]
    wih_t = jnp.transpose(w_ih).astype(matmul_dtype)
    whh_t = jnp.transpose(w_hh).astype(matmul_dtype)
    b = (b_ih + b_hh)[None, :]

    def step(carry, xt):
        h, c = carry
        gates = (jnp.dot(xt.astype(matmul_dtype), wih_t,
                         preferred_element_type=jnp.float32)
                 + jnp.dot(h.astype(matmul_dtype), whh_t,
                           preferred_element_type=jnp.float32)
                 + b)
        i_g = jax.nn.sigmoid(gates[:, 0 * H:1 * H])
        f_g = jax.nn.sigmoid(gates[:, 1 * H:2 * H])
        g_g = jnp.tanh(gates[:, 2 * H:3 * H])
        o_g = jax.nn.sigmoid(gates[:, 3 * H:4 * H])
        c = f_g * c + i_g * g_g
        h = o_g * jnp.tanh(c)
        return (h, c), h

    init = (jnp.zeros((Bd, H), jnp.float32), jnp.zeros((Bd, H), jnp.float32))
    (h_n, c_n), out = lax.scan(step, init, x_seq)
    return out, h_n, c_n


if __name__ == "__main__":
    # Small, module-consistent shapes.
    B, T = 2, 8
    x_feat = 6
    embedding_sizes = [(10, 3), (12, 3)]        # two categorical features
    cal_embedding_sizes = (7, 4)                # one calendar table, used twice
    config = {"rnn_num_hidden": 32, "rnn_num_layers": 2,
              "enc_rnn_dropout": 0.0, "bidirectional": 1}
    input_size = (x_feat + sum(d for _, d in embedding_sizes)
                  + 2 * cal_embedding_sizes[1])   # = 20, the DRNN input width

    key = jax.random.PRNGKey(0)
    k_par, k_x, k_e, k_c = jax.random.split(key, 4)

    params = make_params(k_par, input_size, embedding_sizes,
                         cal_embedding_sizes, config)

    x = jax.random.normal(k_x, (B, T, x_feat), jnp.float32)
    x_emb = jnp.stack(
        [jax.random.randint(jax.random.fold_in(k_e, i), (B, T), 0, c)
         for i, (c, _) in enumerate(embedding_sizes)], axis=2).astype(jnp.int32)
    x_cal_emb = jax.random.randint(
        k_c, (B, T, 2), 0, cal_embedding_sizes[0]).astype(jnp.int32)

    # --- Sanity-check the Pallas recurrence (rate=1, single direction).
    p0 = params["drnns"][0][0]
    prep0 = prepare_drnn_params([[p0]])[0]
    xs_tm = jnp.transpose(x, (1, 0, 2))
    xs_tm = jnp.concatenate(
        [xs_tm, jnp.zeros((T, B, input_size - x_feat), jnp.float32)], axis=2)
    o_k, h_k, c_k = dilated_lstm_pallas(
        xs_tm[None], prep0["wih_t"], prep0["whh_t"], prep0["bias"], rate=1)

    # Tight check vs. a reference using the same bf16-operand / f32-accum policy.
    o_b, h_b, c_b = _lstm_ref(xs_tm, p0["w_ih"], p0["w_hh"], p0["b_ih"], p0["b_hh"],
                              matmul_dtype=jnp.bfloat16)
    assert jnp.allclose(o_k[0], o_b, atol=2e-3, rtol=2e-3)
    assert jnp.allclose(h_k[0], h_b, atol=2e-3, rtol=2e-3)
    assert jnp.allclose(c_k[0], c_b, atol=2e-3, rtol=2e-3)

    # Looser check vs. the pure-f32 torch-equivalent reference (bounded bf16 drift).
    o_r, h_r, c_r = _lstm_ref(xs_tm, p0["w_ih"], p0["w_hh"], p0["b_ih"], p0["b_hh"])
    assert jnp.allclose(o_k[0], o_r, atol=5e-2, rtol=5e-2)
    assert jnp.allclose(h_k[0], h_r, atol=5e-2, rtol=5e-2)
    assert jnp.allclose(c_k[0], c_r, atol=5e-2, rtol=5e-2)

    drnn_outputs, drnn_hiddens = encoder_forward(params, config, x, x_emb, x_cal_emb)
    jax.block_until_ready((drnn_outputs, drnn_hiddens))

    # Expected shapes (bidirectional=1, L=2, H=32):
    #   drnn_outputs[i]      : (T, B, 2H)
    #   drnn_hiddens[j][i]   : (2**i, B, H, 2)
    assert drnn_outputs[0].shape == (T, B, 2 * config["rnn_num_hidden"])
    assert drnn_outputs[1].shape == (T, B, 2 * config["rnn_num_hidden"])
    assert drnn_hiddens[0][0].shape == (1, B, config["rnn_num_hidden"], 2)
    assert drnn_hiddens[0][1].shape == (2, B, config["rnn_num_hidden"], 2)

    print("KERNEL_OK")
</pallas_src>

<mosaic_0001>
module attributes {stable_mosaic.version = 11 : i64} {
  func.func @_lstm_chunk_kernel(%arg0: i32, %arg1: i32, %arg2: memref<1x8x2x128xf32, #tpu.memory_space<vmem>>, %arg3: memref<1x32x128xbf16, #tpu.memory_space<vmem>>, %arg4: memref<1x8x2x32xf32, #tpu.memory_space<vmem>>, %arg5: memref<1x2x32xf32, #tpu.memory_space<vmem>>, %arg6: memref<1x2x32xf32, #tpu.memory_space<vmem>>, %arg7: memref<2x32xf32, #tpu.memory_space<vmem>>, %arg8: memref<2x32xf32, #tpu.memory_space<vmem>>) attributes {dimension_semantics = [#tpu.dimension_semantics<parallel>, #tpu.dimension_semantics<arbitrary>], iteration_bounds = array<i64: 1, 1>, scalar_prefetch = 0 : i64, scratch_operands = 2 : i64, tpu.core_type = #tpu.core_type<tc>, window_params = [{transform_indices = @transform_0, window_bounds = array<i64: 1, 8, 2, 128>}, {transform_indices = @transform_1, window_bounds = array<i64: 1, 32, 128>}, {transform_indices = @transform_2, window_bounds = array<i64: 1, 8, 2, 32>}, {transform_indices = @transform_3, window_bounds = array<i64: 1, 2, 32>}, {transform_indices = @transform_4, window_bounds = array<i64: 1, 2, 32>}]} {
    %c0_i32 = arith.constant 0 : i32
    %0 = arith.cmpi eq, %arg1, %c0_i32 : i32
    %1 = arith.extui %0 : i1 to i32
    %c0_i32_0 = arith.constant 0 : i32
    %2 = arith.cmpi ne, %1, %c0_i32_0 : i32
    scf.if %2 {
      %cst_85 = arith.constant 0.000000e+00 : f32
      %204 = vector.broadcast %cst_85 : f32 to vector<2x32xf32>
      %c0_86 = arith.constant 0 : index
      %c0_87 = arith.constant 0 : index
      %205 = vector.load %arg7[%c0_86, %c0_87] : memref<2x32xf32, #tpu.memory_space<vmem>>, vector<2x32xf32>
      tpu.vector_store %arg7[%c0_86, %c0_87], %204 {strides = array<i32>} : memref<2x32xf32, #tpu.memory_space<vmem>>, vector<2x32xf32>,
      %cst_88 = arith.constant 0.000000e+00 : f32
      %206 = vector.broadcast %cst_88 : f32 to vector<2x32xf32>
      %c0_89 = arith.constant 0 : index
      %c0_90 = arith.constant 0 : index
      %207 = vector.load %arg8[%c0_89, %c0_90] : memref<2x32xf32, #tpu.memory_space<vmem>>, vector<2x32xf32>
      tpu.vector_store %arg8[%c0_89, %c0_90], %206 {strides = array<i32>} : memref<2x32xf32, #tpu.memory_space<vmem>>, vector<2x32xf32>,
    } else {
    }
    %c0 = arith.constant 0 : index
    %c0_1 = arith.constant 0 : index
    %c0_2 = arith.constant 0 : index
    %3 = vector.load %arg3[%c0, %c0_1, %c0_2] : memref<1x32x128xbf16, #tpu.memory_space<vmem>>, vector<1x32x128xbf16>
    %4 = vector.shape_cast %3 : vector<1x32x128xbf16> to vector<32x128xbf16>
    %c0_3 = arith.constant 0 : index
    %c0_4 = arith.constant 0 : index
    %5 = vector.load %arg7[%c0_3, %c0_4] : memref<2x32xf32, #tpu.memory_space<vmem>>, vector<2x32xf32>
    %c0_5 = arith.constant 0 : index
    %c0_6 = arith.constant 0 : index
    %6 = vector.load %arg8[%c0_5, %c0_6] : memref<2x32xf32, #tpu.memory_space<vmem>>, vector<2x32xf32>
    %c0_7 = arith.constant 0 : index
    %c0_8 = arith.constant 0 : index
    %c0_9 = arith.constant 0 : index
    %c0_10 = arith.constant 0 : index
    %7 = vector.load %arg2[%c0_7, %c0_8, %c0_9, %c0_10] : memref<1x8x2x128xf32, #tpu.memory_space<vmem>>, vector<1x1x2x128xf32>
    %8 = vector.shape_cast %7 : vector<1x1x2x128xf32> to vector<2x128xf32>
    %9 = arith.truncf %5 : vector<2x32xf32> to vector<2x32xbf16>
    %cst = arith.constant dense<0.000000e+00> : vector<2x128xf32>
    %10 = tpu.matmul %9, %4, %cst {dimension_numbers = #tpu.dot_dimension_numbers<[1], [0], [0], [1], [0, 0, 1, 1], [], []>} : vector<2x32xbf16>, vector<32x128xbf16>, vector<2x128xf32> -> vector<2x128xf32>
    %11 = arith.addf %8, %10 : vector<2x128xf32>
    %12 = vector.extract_strided_slice %11 {offsets = [0, 0], sizes = [2, 96], strides = [1, 1]} : vector<2x128xf32> to vector<2x96xf32>
    %13 = arith.negf %12 : vector<2x96xf32>
    %14 = math.exp %13 : vector<2x96xf32>
    %cst_11 = arith.constant 1.000000e+00 : f32
    %15 = vector.broadcast %cst_11 : f32 to vector<2x96xf32>
    %16 = arith.addf %15, %14 : vector<2x96xf32>
    %17 = arith.divf %15, %16 : vector<2x96xf32>
    %18 = vector.extract_strided_slice %11 {offsets = [0, 96], sizes = [2, 32], strides = [1, 1]} : vector<2x128xf32> to vector<2x32xf32>
    %19 = math.tanh %18 : vector<2x32xf32>
    %20 = vector.extract_strided_slice %17 {offsets = [0, 32], sizes = [2, 32], strides = [1, 1]} : vector<2x96xf32> to vector<2x32xf32>
    %21 = arith.mulf %20, %6 : vector<2x32xf32>
    %22 = vector.extract_strided_slice %17 {offsets = [0, 0], sizes = [2, 32], strides = [1, 1]} : vector<2x96xf32> to vector<2x32xf32>
    %23 = arith.mulf %22, %19 : vector<2x32xf32>
    %24 = arith.addf %21, %23 : vector<2x32xf32>
    %25 = vector.extract_strided_slice %17 {offsets = [0, 64], sizes = [2, 32], strides = [1, 1]} : vector<2x96xf32> to vector<2x32xf32>
    %26 = math.tanh %24 : vector<2x32xf32>
    %27 = arith.mulf %25, %26 : vector<2x32xf32>
    %c0_12 = arith.constant 0 : index
    %c0_13 = arith.constant 0 : index
    %c0_14 = arith.constant 0 : index
    %c0_15 = arith.constant 0 : index
    %28 = vector.load %arg4[%c0_12, %c0_13, %c0_14, %c0_15] : memref<1x8x2x32xf32, #tpu.memory_space<vmem>>, vector<1x1x2x32xf32>
    %29 = vector.shape_cast %28 : vector<1x1x2x32xf32> to vector<2x32xf32>
    %30 = vector.shape_cast %27 : vector<2x32xf32> to vector<1x1x2x32xf32>
    tpu.vector_store %arg4[%c0_12, %c0_13, %c0_14, %c0_15], %30 {strides = array<i32>} : memref<1x8x2x32xf32, #tpu.memory_space<vmem>>, vector<1x1x2x32xf32>,
    %c0_16 = arith.constant 0 : index
    %c1 = arith.constant 1 : index
    %c0_17 = arith.constant 0 : index
    %c0_18 = arith.constant 0 : index
    %31 = vector.load %arg2[%c0_16, %c1, %c0_17, %c0_18] : memref<1x8x2x128xf32, #tpu.memory_space<vmem>>, vector<1x1x2x128xf32>
    %32 = vector.shape_cast %31 : vector<1x1x2x128xf32> to vector<2x128xf32>
    %33 = arith.truncf %27 : vector<2x32xf32> to vector<2x32xbf16>
    %cst_19 = arith.constant dense<0.000000e+00> : vector<2x128xf32>
    %34 = tpu.matmul %33, %4, %cst_19 {dimension_numbers = #tpu.dot_dimension_numbers<[1], [0], [0], [1], [0, 0, 1, 1], [], []>} : vector<2x32xbf16>, vector<32x128xbf16>, vector<2x128xf32> -> vector<2x128xf32>
    %35 = arith.addf %32, %34 : vector<2x128xf32>
    %36 = vector.extract_strided_slice %35 {offsets = [0, 0], sizes = [2, 96], strides = [1, 1]} : vector<2x128xf32> to vector<2x96xf32>
    %37 = arith.negf %36 : vector<2x96xf32>
    %38 = math.exp %37 : vector<2x96xf32>
    %cst_20 = arith.constant 1.000000e+00 : f32
    %39 = vector.broadcast %cst_20 : f32 to vector<2x96xf32>
    %40 = arith.addf %39, %38 : vector<2x96xf32>
    %41 = arith.divf %39, %40 : vector<2x96xf32>
    %42 = vector.extract_strided_slice %35 {offsets = [0, 96], sizes = [2, 32], strides = [1, 1]} : vector<2x128xf32> to vector<2x32xf32>
    %43 = math.tanh %42 : vector<2x32xf32>
    %44 = vector.extract_strided_slice %41 {offsets = [0, 32], sizes = [2, 32], strides = [1, 1]} : vector<2x96xf32> to vector<2x32xf32>
    %45 = arith.mulf %44, %24 : vector<2x32xf32>
    %46 = vector.extract_strided_slice %41 {offsets = [0, 0], sizes = [2, 32], strides = [1, 1]} : vector<2x96xf32> to vector<2x32xf32>
    %47 = arith.mulf %46, %43 : vector<2x32xf32>
    %48 = arith.addf %45, %47 : vector<2x32xf32>
    %49 = vector.extract_strided_slice %41 {offsets = [0, 64], sizes = [2, 32], strides = [1, 1]} : vector<2x96xf32> to vector<2x32xf32>
    %50 = math.tanh %48 : vector<2x32xf32>
    %51 = arith.mulf %49, %50 : vector<2x32xf32>
    %c0_21 = arith.constant 0 : index
    %c1_22 = arith.constant 1 : index
    %c0_23 = arith.constant 0 : index
    %c0_24 = arith.constant 0 : index
    %52 = vector.load %arg4[%c0_21, %c1_22, %c0_23, %c0_24] : memref<1x8x2x32xf32, #tpu.memory_space<vmem>>, vector<1x1x2x32xf32>
    %53 = vector.shape_cast %52 : vector<1x1x2x32xf32> to vector<2x32xf32>
    %54 = vector.shape_cast %51 : vector<2x32xf32> to vector<1x1x2x32xf32>
    tpu.vector_store %arg4[%c0_21, %c1_22, %c0_23, %c0_24], %54 {strides = array<i32>} : memref<1x8x2x32xf32, #tpu.memory_space<vmem>>, vector<1x1x2x32xf32>,
    %c0_25 = arith.constant 0 : index
    %c2 = arith.constant 2 : index
    %c0_26 = arith.constant 0 : index
    %c0_27 = arith.constant 0 : index
    %55 = vector.load %arg2[%c0_25, %c2, %c0_26, %c0_27] : memref<1x8x2x128xf32, #tpu.memory_space<vmem>>, vector<1x1x2x128xf32>
    %56 = vector.shape_cast %55 : vector<1x1x2x128xf32> to vector<2x128xf32>
    %57 = arith.truncf %51 : vector<2x32xf32> to vector<2x32xbf16>
    %cst_28 = arith.constant dense<0.000000e+00> : vector<2x128xf32>
    %58 = tpu.matmul %57, %4, %cst_28 {dimension_numbers = #tpu.dot_dimension_numbers<[1], [0], [0], [1], [0, 0, 1, 1], [], []>} : vector<2x32xbf16>, vector<32x128xbf16>, vector<2x128xf32> -> vector<2x128xf32>
    %59 = arith.addf %56, %58 : vector<2x128xf32>
    %60 = vector.extract_strided_slice %59 {offsets = [0, 0], sizes = [2, 96], strides = [1, 1]} : vector<2x128xf32> to vector<2x96xf32>
    %61 = arith.negf %60 : vector<2x96xf32>
    %62 = math.exp %61 : vector<2x96xf32>
    %cst_29 = arith.constant 1.000000e+00 : f32
    %63 = vector.broadcast %cst_29 : f32 to vector<2x96xf32>
    %64 = arith.addf %63, %62 : vector<2x96xf32>
    %65 = arith.divf %63, %64 : vector<2x96xf32>
    %66 = vector.extract_strided_slice %59 {offsets = [0, 96], sizes = [2, 32], strides = [1, 1]} : vector<2x128xf32> to vector<2x32xf32>
    %67 = math.tanh %66 : vector<2x32xf32>
    %68 = vector.extract_strided_slice %65 {offsets = [0, 32], sizes = [2, 32], strides = [1, 1]} : vector<2x96xf32> to vector<2x32xf32>
    %69 = arith.mulf %68, %48 : vector<2x32xf32>
    %70 = vector.extract_strided_slice %65 {offsets = [0, 0], sizes = [2, 32], strides = [1, 1]} : vector<2x96xf32> to vector<2x32xf32>
    %71 = arith.mulf %70, %67 : vector<2x32xf32>
    %72 = arith.addf %69, %71 : vector<2x32xf32>
    %73 = vector.extract_strided_slice %65 {offsets = [0, 64], sizes = [2, 32], strides = [1, 1]} : vector<2x96xf32> to vector<2x32xf32>
    %74 = math.tanh %72 : vector<2x32xf32>
    %75 = arith.mulf %73, %74 : vector<2x32xf32>
    %c0_30 = arith.constant 0 : index
    %c2_31 = arith.constant 2 : index
    %c0_32 = arith.constant 0 : index
    %c0_33 = arith.constant 0 : index
    %76 = vector.load %arg4[%c0_30, %c2_31, %c0_32, %c0_33] : memref<1x8x2x32xf32, #tpu.memory_space<vmem>>, vector<1x1x2x32xf32>
    %77 = vector.shape_cast %76 : vector<1x1x2x32xf32> to vector<2x32xf32>
    %78 = vector.shape_cast %75 : vector<2x32xf32> to vector<1x1x2x32xf32>
    tpu.vector_store %arg4[%c0_30, %c2_31, %c0_32, %c0_33], %78 {strides = array<i32>} : memref<1x8x2x32xf32, #tpu.memory_space<vmem>>, vector<1x1x2x32xf32>,
    %c0_34 = arith.constant 0 : index
    %c3 = arith.constant 3 : index
    %c0_35 = arith.constant 0 : index
    %c0_36 = arith.constant 0 : index
    %79 = vector.load %arg2[%c0_34, %c3, %c0_35, %c0_36] : memref<1x8x2x128xf32, #tpu.memory_space<vmem>>, vector<1x1x2x128xf32>
    %80 = vector.shape_cast %79 : vector<1x1x2x128xf32> to vector<2x128xf32>
    %81 = arith.truncf %75 : vector<2x32xf32> to vector<2x32xbf16>
    %cst_37 = arith.constant dense<0.000000e+00> : vector<2x128xf32>
    %82 = tpu.matmul %81, %4, %cst_37 {dimension_numbers = #tpu.dot_dimension_numbers<[1], [0], [0], [1], [0, 0, 1, 1], [], []>} : vector<2x32xbf16>, vector<32x128xbf16>, vector<2x128xf32> -> vector<2x128xf32>
    %83 = arith.addf %80, %82 : vector<2x128xf32>
    %84 = vector.extract_strided_slice %83 {offsets = [0, 0], sizes = [2, 96], strides = [1, 1]} : vector<2x128xf32> to vector<2x96xf32>
    %85 = arith.negf %84 : vector<2x96xf32>
    %86 = math.exp %85 : vector<2x96xf32>
    %cst_38 = arith.constant 1.000000e+00 : f32
    %87 = vector.broadcast %cst_38 : f32 to vector<2x96xf32>
    %88 = arith.addf %87, %86 : vector<2x96xf32>
    %89 = arith.divf %87, %88 : vector<2x96xf32>
    %90 = vector.extract_strided_slice %83 {offsets = [0, 96], sizes = [2, 32], strides = [1, 1]} : vector<2x128xf32> to vector<2x32xf32>
    %91 = math.tanh %90 : vector<2x32xf32>
    %92 = vector.extract_strided_slice %89 {offsets = [0, 32], sizes = [2, 32], strides = [1, 1]} : vector<2x96xf32> to vector<2x32xf32>
    %93 = arith.mulf %92, %72 : vector<2x32xf32>
    %94 = vector.extract_strided_slice %89 {offsets = [0, 0], sizes = [2, 32], strides = [1, 1]} : vector<2x96xf32> to vector<2x32xf32>
    %95 = arith.mulf %94, %91 : vector<2x32xf32>
    %96 = arith.addf %93, %95 : vector<2x32xf32>
    %97 = vector.extract_strided_slice %89 {offsets = [0, 64], sizes = [2, 32], strides = [1, 1]} : vector<2x96xf32> to vector<2x32xf32>
    %98 = math.tanh %96 : vector<2x32xf32>
    %99 = arith.mulf %97, %98 : vector<2x32xf32>
    %c0_39 = arith.constant 0 : index
    %c3_40 = arith.constant 3 : index
    %c0_41 = arith.constant 0 : index
    %c0_42 = arith.constant 0 : index
    %100 = vector.load %arg4[%c0_39, %c3_40, %c0_41, %c0_42] : memref<1x8x2x32xf32, #tpu.memory_space<vmem>>, vector<1x1x2x32xf32>
    %101 = vector.shape_cast %100 : vector<1x1x2x32xf32> to vector<2x32xf32>
    %102 = vector.shape_cast %99 : vector<2x32xf32> to vector<1x1x2x32xf32>
    tpu.vector_store %arg4[%c0_39, %c3_40, %c0_41, %c0_42], %102 {strides = array<i32>} : memref<1x8x2x32xf32, #tpu.memory_space<vmem>>, vector<1x1x2x32xf32>,
    %c0_43 = arith.constant 0 : index
    %c4 = arith.constant 4 : index
    %c0_44 = arith.constant 0 : index
    %c0_45 = arith.constant 0 : index
    %103 = vector.load %arg2[%c0_43, %c4, %c0_44, %c0_45] : memref<1x8x2x128xf32, #tpu.memory_space<vmem>>, vector<1x1x2x128xf32>
    %104 = vector.shape_cast %103 : vector<1x1x2x128xf32> to vector<2x128xf32>
    %105 = arith.truncf %99 : vector<2x32xf32> to vector<2x32xbf16>
    %cst_46 = arith.constant dense<0.000000e+00> : vector<2x128xf32>
    %106 = tpu.matmul %105, %4, %cst_46 {dimension_numbers = #tpu.dot_dimension_numbers<[1], [0], [0], [1], [0, 0, 1, 1], [], []>} : vector<2x32xbf16>, vector<32x128xbf16>, vector<2x128xf32> -> vector<2x128xf32>
    %107 = arith.addf %104, %106 : vector<2x128xf32>
    %108 = vector.extract_strided_slice %107 {offsets = [0, 0], sizes = [2, 96], strides = [1, 1]} : vector<2x128xf32> to vector<2x96xf32>
    %109 = arith.negf %108 : vector<2x96xf32>
    %110 = math.exp %109 : vector<2x96xf32>
    %cst_47 = arith.constant 1.000000e+00 : f32
    %111 = vector.broadcast %cst_47 : f32 to vector<2x96xf32>
    %112 = arith.addf %111, %110 : vector<2x96xf32>
    %113 = arith.divf %111, %112 : vector<2x96xf32>
    %114 = vector.extract_strided_slice %107 {offsets = [0, 96], sizes = [2, 32], strides = [1, 1]} : vector<2x128xf32> to vector<2x32xf32>
    %115 = math.tanh %114 : vector<2x32xf32>
    %116 = vector.extract_strided_slice %113 {offsets = [0, 32], sizes = [2, 32], strides = [1, 1]} : vector<2x96xf32> to vector<2x32xf32>
    %117 = arith.mulf %116, %96 : vector<2x32xf32>
    %118 = vector.extract_strided_slice %113 {offsets = [0, 0], sizes = [2, 32], strides = [1, 1]} : vector<2x96xf32> to vector<2x32xf32>
    %119 = arith.mulf %118, %115 : vector<2x32xf32>
    %120 = arith.addf %117, %119 : vector<2x32xf32>
    %121 = vector.extract_strided_slice %113 {offsets = [0, 64], sizes = [2, 32], strides = [1, 1]} : vector<2x96xf32> to vector<2x32xf32>
    %122 = math.tanh %120 : vector<2x32xf32>
    %123 = arith.mulf %121, %122 : vector<2x32xf32>
    %c0_48 = arith.constant 0 : index
    %c4_49 = arith.constant 4 : index
    %c0_50 = arith.constant 0 : index
    %c0_51 = arith.constant 0 : index
    %124 = vector.load %arg4[%c0_48, %c4_49, %c0_50, %c0_51] : memref<1x8x2x32xf32, #tpu.memory_space<vmem>>, vector<1x1x2x32xf32>
    %125 = vector.shape_cast %124 : vector<1x1x2x32xf32> to vector<2x32xf32>
    %126 = vector.shape_cast %123 : vector<2x32xf32> to vector<1x1x2x32xf32>
    tpu.vector_store %arg4[%c0_48, %c4_49, %c0_50, %c0_51], %126 {strides = array<i32>} : memref<1x8x2x32xf32, #tpu.memory_space<vmem>>, vector<1x1x2x32xf32>,
    %c0_52 = arith.constant 0 : index
    %c5 = arith.constant 5 : index
    %c0_53 = arith.constant 0 : index
    %c0_54 = arith.constant 0 : index
    %127 = vector.load %arg2[%c0_52, %c5, %c0_53, %c0_54] : memref<1x8x2x128xf32, #tpu.memory_space<vmem>>, vector<1x1x2x128xf32>
    %128 = vector.shape_cast %127 : vector<1x1x2x128xf32> to vector<2x128xf32>
    %129 = arith.truncf %123 : vector<2x32xf32> to vector<2x32xbf16>
    %cst_55 = arith.constant dense<0.000000e+00> : vector<2x128xf32>
    %130 = tpu.matmul %129, %4, %cst_55 {dimension_numbers = #tpu.dot_dimension_numbers<[1], [0], [0], [1], [0, 0, 1, 1], [], []>} : vector<2x32xbf16>, vector<32x128xbf16>, vector<2x128xf32> -> vector<2x128xf32>
    %131 = arith.addf %128, %130 : vector<2x128xf32>
    %132 = vector.extract_strided_slice %131 {offsets = [0, 0], sizes = [2, 96], strides = [1, 1]} : vector<2x128xf32> to vector<2x96xf32>
    %133 = arith.negf %132 : vector<2x96xf32>
    %134 = math.exp %133 : vector<2x96xf32>
    %cst_56 = arith.constant 1.000000e+00 : f32
    %135 = vector.broadcast %cst_56 : f32 to vector<2x96xf32>
    %136 = arith.addf %135, %134 : vector<2x96xf32>
    %137 = arith.divf %135, %136 : vector<2x96xf32>
    %138 = vector.extract_strided_slice %131 {offsets = [0, 96], sizes = [2, 32], strides = [1, 1]} : vector<2x128xf32> to vector<2x32xf32>
    %139 = math.tanh %138 : vector<2x32xf32>
    %140 = vector.extract_strided_slice %137 {offsets = [0, 32], sizes = [2, 32], strides = [1, 1]} : vector<2x96xf32> to vector<2x32xf32>
    %141 = arith.mulf %140, %120 : vector<2x32xf32>
    %142 = vector.extract_strided_slice %137 {offsets = [0, 0], sizes = [2, 32], strides = [1, 1]} : vector<2x96xf32> to vector<2x32xf32>
    %143 = arith.mulf %142, %139 : vector<2x32xf32>
    %144 = arith.addf %141, %143 : vector<2x32xf32>
    %145 = vector.extract_strided_slice %137 {offsets = [0, 64], sizes = [2, 32], strides = [1, 1]} : vector<2x96xf32> to vector<2x32xf32>
    %146 = math.tanh %144 : vector<2x32xf32>
    %147 = arith.mulf %145, %146 : vector<2x32xf32>
    %c0_57 = arith.constant 0 : index
    %c5_58 = arith.constant 5 : index
    %c0_59 = arith.constant 0 : index
    %c0_60 = arith.constant 0 : index
    %148 = vector.load %arg4[%c0_57, %c5_58, %c0_59, %c0_60] : memref<1x8x2x32xf32, #tpu.memory_space<vmem>>, vector<1x1x2x32xf32>
    %149 = vector.shape_cast %148 : vector<1x1x2x32xf32> to vector<2x32xf32>
    %150 = vector.shape_cast %147 : vector<2x32xf32> to vector<1x1x2x32xf32>
    tpu.vector_store %arg4[%c0_57, %c5_58, %c0_59, %c0_60], %150 {strides = array<i32>} : memref<1x8x2x32xf32, #tpu.memory_space<vmem>>, vector<1x1x2x32xf32>,
    %c0_61 = arith.constant 0 : index
    %c6 = arith.constant 6 : index
    %c0_62 = arith.constant 0 : index
    %c0_63 = arith.constant 0 : index
    %151 = vector.load %arg2[%c0_61, %c6, %c0_62, %c0_63] : memref<1x8x2x128xf32, #tpu.memory_space<vmem>>, vector<1x1x2x128xf32>
    %152 = vector.shape_cast %151 : vector<1x1x2x128xf32> to vector<2x128xf32>
    %153 = arith.truncf %147 : vector<2x32xf32> to vector<2x32xbf16>
    %cst_64 = arith.constant dense<0.000000e+00> : vector<2x128xf32>
    %154 = tpu.matmul %153, %4, %cst_64 {dimension_numbers = #tpu.dot_dimension_numbers<[1], [0], [0], [1], [0, 0, 1, 1], [], []>} : vector<2x32xbf16>, vector<32x128xbf16>, vector<2x128xf32> -> vector<2x128xf32>
    %155 = arith.addf %152, %154 : vector<2x128xf32>
    %156 = vector.extract_strided_slice %155 {offsets = [0, 0], sizes = [2, 96], strides = [1, 1]} : vector<2x128xf32> to vector<2x96xf32>
    %157 = arith.negf %156 : vector<2x96xf32>
    %158 = math.exp %157 : vector<2x96xf32>
    %cst_65 = arith.constant 1.000000e+00 : f32
    %159 = vector.broadcast %cst_65 : f32 to vector<2x96xf32>
    %160 = arith.addf %159, %158 : vector<2x96xf32>
    %161 = arith.divf %159, %160 : vector<2x96xf32>
    %162 = vector.extract_strided_slice %155 {offsets = [0, 96], sizes = [2, 32], strides = [1, 1]} : vector<2x128xf32> to vector<2x32xf32>
    %163 = math.tanh %162 : vector<2x32xf32>
    %164 = vector.extract_strided_slice %161 {offsets = [0, 32], sizes = [2, 32], strides = [1, 1]} : vector<2x96xf32> to vector<2x32xf32>
    %165 = arith.mulf %164, %144 : vector<2x32xf32>
    %166 = vector.extract_strided_slice %161 {offsets = [0, 0], sizes = [2, 32], strides = [1, 1]} : vector<2x96xf32> to vector<2x32xf32>
    %167 = arith.mulf %166, %163 : vector<2x32xf32>
    %168 = arith.addf %165, %167 : vector<2x32xf32>
    %169 = vector.extract_strided_slice %161 {offsets = [0, 64], sizes = [2, 32], strides = [1, 1]} : vector<2x96xf32> to vector<2x32xf32>
    %170 = math.tanh %168 : vector<2x32xf32>
    %171 = arith.mulf %169, %170 : vector<2x32xf32>
    %c0_66 = arith.constant 0 : index
    %c6_67 = arith.constant 6 : index
    %c0_68 = arith.constant 0 : index
    %c0_69 = arith.constant 0 : index
    %172 = vector.load %arg4[%c0_66, %c6_67, %c0_68, %c0_69] : memref<1x8x2x32xf32, #tpu.memory_space<vmem>>, vector<1x1x2x32xf32>
    %173 = vector.shape_cast %172 : vector<1x1x2x32xf32> to vector<2x32xf32>
    %174 = vector.shape_cast %171 : vector<2x32xf32> to vector<1x1x2x32xf32>
    tpu.vector_store %arg4[%c0_66, %c6_67, %c0_68, %c0_69], %174 {strides = array<i32>} : memref<1x8x2x32xf32, #tpu.memory_space<vmem>>, vector<1x1x2x32xf32>,
    %c0_70 = arith.constant 0 : index
    %c7 = arith.constant 7 : index
    %c0_71 = arith.constant 0 : index
    %c0_72 = arith.constant 0 : index
    %175 = vector.load %arg2[%c0_70, %c7, %c0_71, %c0_72] : memref<1x8x2x128xf32, #tpu.memory_space<vmem>>, vector<1x1x2x128xf32>
    %176 = vector.shape_cast %175 : vector<1x1x2x128xf32> to vector<2x128xf32>
    %177 = arith.truncf %171 : vector<2x32xf32> to vector<2x32xbf16>
    %cst_73 = arith.constant dense<0.000000e+00> : vector<2x128xf32>
    %178 = tpu.matmul %177, %4, %cst_73 {dimension_numbers = #tpu.dot_dimension_numbers<[1], [0], [0], [1], [0, 0, 1, 1], [], []>} : vector<2x32xbf16>, vector<32x128xbf16>, vector<2x128xf32> -> vector<2x128xf32>
    %179 = arith.addf %176, %178 : vector<2x128xf32>
    %180 = vector.extract_strided_slice %179 {offsets = [0, 0], sizes = [2, 96], strides = [1, 1]} : vector<2x128xf32> to vector<2x96xf32>
    %181 = arith.negf %180 : vector<2x96xf32>
    %182 = math.exp %181 : vector<2x96xf32>
    %cst_74 = arith.constant 1.000000e+00 : f32
    %183 = vector.broadcast %cst_74 : f32 to vector<2x96xf32>
    %184 = arith.addf %183, %182 : vector<2x96xf32>
    %185 = arith.divf %183, %184 : vector<2x96xf32>
    %186 = vector.extract_strided_slice %179 {offsets = [0, 96], sizes = [2, 32], strides = [1, 1]} : vector<2x128xf32> to vector<2x32xf32>
    %187 = math.tanh %186 : vector<2x32xf32>
    %188 = vector.extract_strided_slice %185 {offsets = [0, 32], sizes = [2, 32], strides = [1, 1]} : vector<2x96xf32> to vector<2x32xf32>
    %189 = arith.mulf %188, %168 : vector<2x32xf32>
    %190 = vector.extract_strided_slice %185 {offsets = [0, 0], sizes = [2, 32], strides = [1, 1]} : vector<2x96xf32> to vector<2x32xf32>
    %191 = arith.mulf %190, %187 : vector<2x32xf32>
    %192 = arith.addf %189, %191 : vector<2x32xf32>
    %193 = vector.extract_strided_slice %185 {offsets = [0, 64], sizes = [2, 32], strides = [1, 1]} : vector<2x96xf32> to vector<2x32xf32>
    %194 = math.tanh %192 : vector<2x32xf32>
    %195 = arith.mulf %193, %194 : vector<2x32xf32>
    %c0_75 = arith.constant 0 : index
    %c7_76 = arith.constant 7 : index
    %c0_77 = arith.constant 0 : index
    %c0_78 = arith.constant 0 : index
    %196 = vector.load %arg4[%c0_75, %c7_76, %c0_77, %c0_78] : memref<1x8x2x32xf32, #tpu.memory_space<vmem>>, vector<1x1x2x32xf32>
    %197 = vector.shape_cast %196 : vector<1x1x2x32xf32> to vector<2x32xf32>
    %198 = vector.shape_cast %195 : vector<2x32xf32> to vector<1x1x2x32xf32>
    tpu.vector_store %arg4[%c0_75, %c7_76, %c0_77, %c0_78], %198 {strides = array<i32>} : memref<1x8x2x32xf32, #tpu.memory_space<vmem>>, vector<1x1x2x32xf32>,
    %c0_79 = arith.constant 0 : index
    %c0_80 = arith.constant 0 : index
    %199 = vector.load %arg7[%c0_79, %c0_80] : memref<2x32xf32, #tpu.memory_space<vmem>>, vector<2x32xf32>
    tpu.vector_store %arg7[%c0_79, %c0_80], %195 {strides = array<i32>} : memref<2x32xf32, #tpu.memory_space<vmem>>, vector<2x32xf32>,
    %c0_81 = arith.constant 0 : index
    %c0_82 = arith.constant 0 : index
    %200 = vector.load %arg8[%c0_81, %c0_82] : memref<2x32xf32, #tpu.memory_space<vmem>>, vector<2x32xf32>
    tpu.vector_store %arg8[%c0_81, %c0_82], %192 {strides = array<i32>} : memref<2x32xf32, #tpu.memory_space<vmem>>, vector<2x32xf32>,
    %c0_i32_83 = arith.constant 0 : i32
    %201 = arith.cmpi eq, %arg1, %c0_i32_83 : i32
    %202 = arith.extui %201 : i1 to i32
    %c0_i32_84 = arith.constant 0 : i32
    %203 = arith.cmpi ne, %202, %c0_i32_84 : i32
    scf.if %203 {
      %c0_85 = arith.constant 0 : index
      %c0_86 = arith.constant 0 : index
      %c0_87 = arith.constant 0 : index
      %204 = vector.load %arg5[%c0_85, %c0_86, %c0_87] : memref<1x2x32xf32, #tpu.memory_space<vmem>>, vector<1x2x32xf32>
      %205 = vector.shape_cast %204 : vector<1x2x32xf32> to vector<2x32xf32>
      %206 = vector.shape_cast %195 : vector<2x32xf32> to vector<1x2x32xf32>
      tpu.vector_store %arg5[%c0_85, %c0_86, %c0_87], %206 {strides = array<i32>} : memref<1x2x32xf32, #tpu.memory_space<vmem>>, vector<1x2x32xf32>,
      %c0_88 = arith.constant 0 : index
      %c0_89 = arith.constant 0 : index
      %c0_90 = arith.constant 0 : index
      %207 = vector.load %arg6[%c0_88, %c0_89, %c0_90] : memref<1x2x32xf32, #tpu.memory_space<vmem>>, vector<1x2x32xf32>
      %208 = vector.shape_cast %207 : vector<1x2x32xf32> to vector<2x32xf32>
      %209 = vector.shape_cast %192 : vector<2x32xf32> to vector<1x2x32xf32>
      tpu.vector_store %arg6[%c0_88, %c0_89, %c0_90], %209 {strides = array<i32>} : memref<1x2x32xf32, #tpu.memory_space<vmem>>, vector<1x2x32xf32>,
    } else {
    }
    return
  }
  func.func @transform_0(%arg0: i32, %arg1: i32) -> (i32, i32, i32, i32) {
    %c0_i32 = arith.constant 0 : i32
    %c0_i32_0 = arith.constant 0 : i32
    %c0_i32_1 = arith.constant 0 : i32
    return %arg0, %arg1, %c0_i32, %c0_i32_0 : i32, i32, i32, i32
  }
  func.func @transform_1(%arg0: i32, %arg1: i32) -> (i32, i32, i32) {
    %c0_i32 = arith.constant 0 : i32
    %c0_i32_0 = arith.constant 0 : i32
    %c0_i32_1 = arith.constant 0 : i32
    return %arg0, %c0_i32, %c0_i32_0 : i32, i32, i32
  }
  func.func @transform_2(%arg0: i32, %arg1: i32) -> (i32, i32, i32, i32) {
    %c0_i32 = arith.constant 0 : i32
    %c0_i32_0 = arith.constant 0 : i32
    %c0_i32_1 = arith.constant 0 : i32
    return %arg0, %arg1, %c0_i32, %c0_i32_0 : i32, i32, i32, i32
  }
  func.func @transform_3(%arg0: i32, %arg1: i32) -> (i32, i32, i32) {
    %c0_i32 = arith.constant 0 : i32
    %c0_i32_0 = arith.constant 0 : i32
    %c0_i32_1 = arith.constant 0 : i32
    return %arg0, %c0_i32, %c0_i32_0 : i32, i32, i32
  }
  func.func @transform_4(%arg0: i32, %arg1: i32) -> (i32, i32, i32) {
    %c0_i32 = arith.constant 0 : i32
    %c0_i32_0 = arith.constant 0 : i32
    %c0_i32_1 = arith.constant 0 : i32
    return %arg0, %c0_i32, %c0_i32_0 : i32, i32, i32
  }
}

</mosaic_0001>

<bundles_post_ra>
// kernel: tpu_custom_call.1
= control target key start
LH: loop header
LB: loop body
LE: loop exit
PB: predicated region body
PF: predicated region fallthrough
CT: control target
= control target key end

     0   :  { %10 = vsyncpa [#allocation5], 0  ;;  %s1045_s0 = inlined_call_operand.hbm [shape: f32[1,8,2,128], index: 0, kind: input, shape index: {}]   ;;  %s1046_s1 = inlined_call_operand.hbm [shape: bf16[1,32,128], index: 1, kind: input, shape index: {}]   ;;  %s1047_s2 = inlined_call_operand.hbm [shape: f32[1,8,2,32], index: 2, kind: output, shape index: {0}]   ;;  %s1048_s3 = inlined_call_operand.hbm [shape: f32[1,2,32], index: 3, kind: output, shape index: {1}]   ;;  %s1049_s4 = inlined_call_operand.hbm [shape: f32[1,2,32], index: 4, kind: output, shape index: {2}]  }
   0x1   :  { %11 = vsyncpa [#allocation8], 0 }
   0x2   :  { %12 = vsyncpa [#allocation6], 0 }
   0x3   :  { %13 = vsyncpa [#allocation11], 0  ;;  %s18_s17 = sshll.u32 %s1045_s0, 4  ;;  %s894_s18 = smov [#allocation4]   ;;  %s19_s17 = int_to_ptr.hbm [resolvable:$true] %s18_s17 }
   0x4   :  { %s20_s19 = sshll.u32 %s894_s18, 4  ;;  %s31_s22 = sshll.u32 %s1046_s1, 4  ;;  %s21_s19 = int_to_ptr.vmem [resolvable:$true] %s20_s19  ;;  %s32_s22 = int_to_ptr.hbm [resolvable:$true] %s31_s22 }
   0x5   :  { %s895_s23 = smov 32   ;;  %s896_s24 = smov 2  }
   0x6   :  { %26 = dma.hbm_to_vmem [thread:$0]  %s19_s17, 256, %s21_s19, [#allocation5], %s895_s23, %s895_s23, %s896_s24  }
   0x7   :  { %s897_s25 = smov [#allocation7]   ;;  %s898_s27 = smov 64  }
   0x8   :  { %s33_s26 = sshll.u32 %s897_s25, 4  ;;  %s899_s0 = smov 4   ;;  %s34_s26 = int_to_ptr.vmem [resolvable:$true] %s33_s26 }
   0x9   :  { %39 = dma.hbm_to_vmem [thread:$0]  %s32_s22, 256, %s34_s26, [#allocation8], %s898_s27, %s898_s27, %s899_s0  }
   0xa   :  { %886 = dma.done.wait [#allocation5], 256  }
   0xb   :  { %887 = vsyncadd [#allocation5], 4294967040 }
   0xc   :  { %888 = dma.done.wait [#allocation8], 256  }
   0xd   :  { %889 = vsyncadd [#allocation8], 4294967040  ;;  %vm53_vm0 = vcmask 254976   ;;  %v900_v0 = vmov 0.0   ;;  %v690_v1 = vld [vmem:[#allocation7 + $0x8] sm:$0xff]  ;;  %v689_v2 = vld [vmem:[#allocation7] sm:$0xff] }
   0xe   :  { %54 = vst.msk [vmem:[#allocation2] sm:$0x3] %vm53_vm0, %v900_v0  ;;  %86 = vmatpush.bf16.msra.mxu0 %v690_v1  ;;  %156 = vmatpush.bf16.msra.mxu1 %v690_v1  ;;  %vm76_vm1 = vcmask 261120   ;;  %v62_v5 = vld [vmem:[#allocation4] sm:$0x3]  ;;  %s901_s1 = smov 96  }
   0xf   :  { %55 = vst.msk [vmem:[#allocation3] sm:$0x3] %vm53_vm0, %v900_v0  ;;  %222 = vmatpush.bf16.msra.mxu2 %v690_v1  ;;  %288 = vmatpush.bf16.msra.mxu3 %v690_v1  ;;  %v142_v35 = vld [vmem:[#allocation4 + $0x2] sm:$0x3]  ;;  %v208_v63 = vld [vmem:[#allocation4 + $0x4] sm:$0x3] }
  0x10   :  { %s902_s28 = smov [#allocation10]   ;;  %s634_s6 = sshll.u32 %s1048_s3, 4  ;;  %s635_s6 = int_to_ptr.hbm [resolvable:$true] %s634_s6 }
  0x11   :  { %s632_s29 = sshll.u32 %s902_s28, 4  ;;  %s903_s7 = smov [#allocation12]   ;;  %s633_s29 = int_to_ptr.vmem [resolvable:$true] %s632_s29 }
  0x12   :  { %87 = vmatpush.bf16.msra.mxu0 %v689_v2  ;;  %157 = vmatpush.bf16.msra.mxu1 %v689_v2  ;;  %s643_s8 = sshll.u32 %s903_s7, 4  ;;  %s645_s11 = sshll.u32 %s1049_s4, 4  ;;  %s644_s8 = int_to_ptr.vmem [resolvable:$true] %s643_s8  ;;  %s646_s11 = int_to_ptr.hbm [resolvable:$true] %s645_s11 }
  0x13   :  { %223 = vmatpush.bf16.msra.mxu2 %v689_v2  ;;  %289 = vmatpush.bf16.msra.mxu3 %v689_v2  ;;  %s904_s12 = smov [#allocation9]   ;;  %s620_s15 = sshll.u32 %s1047_s2, 4  ;;  %s621_s15 = int_to_ptr.hbm [resolvable:$true] %s620_s15 }
  0x14   :  { %s618_s13 = sshll.u32 %s904_s12, 4  ;;  %s619_s13 = int_to_ptr.vmem [resolvable:$true] %s618_s13 }
  0x15   :  { %v60_v3 = vld [vmem:[#allocation2] sm:$0x3] }
  0x16   :  { %v63_v4 = vpack.c.bf16 %v60_v3, %v60_v3  ;;  %354 = vmatpush.bf16.msrb.mxu0 %v690_v1  ;;  %420 = vmatpush.bf16.msrb.mxu1 %v690_v1  ;;  %v61_v10 = vld [vmem:[#allocation3] sm:$0x3] }
  0x17   :  { %486 = vmatpush.bf16.msrb.mxu2 %v690_v1  ;;  %552 = vmatpush.bf16.msrb.mxu3 %v690_v1 }
  0x18   :  { %673 = vmatmul.msk.bf16.vlgmr.msra.gmra.mxu0 %vm76_vm1, %v63_v4 }
  0x1a   :  { %355 = vmatpush.bf16.msrb.mxu0 %v689_v2  ;;  %421 = vmatpush.bf16.msrb.mxu1 %v689_v2 }
  0x1b   :  { %487 = vmatpush.bf16.msrb.mxu2 %v689_v2  ;;  %553 = vmatpush.bf16.msrb.mxu3 %v689_v2 }
  0x95   :  { %v89_v6 = vpop.f32.mrf.mxu0 }
  0x96   :  { %v93_v7 = vadd.f32 %v89_v6, %v62_v5 }
  0x98   :  { %702 = vtanh.f32 %v93_v7  ;;  %v674_v11 = vmul.f32 -1.442695, %v93_v7 }
  0x9a   :  { %704 = vpow2.f32 %v674_v11 }
  0x9d   :  { %v91_v8 = vpop.f32.mrf.mxu0 }
  0x9e   :  { %v703_v9 = vpop.eup %702 }
  0x9f   :  { %120 = vrot.lane.b32.xlu0 %v703_v9, %s895_s23 }
  0xa0   :  { %v705_v12 = vpop.eup %704 }
  0xa1   :  { %v97_v13 = vadd.f32 1.0, %v705_v12 }
  0xa3   :  { %706 = vrcp.f32 %v97_v13  ;;  %v109_v19 = vand.u32 2147483648, %v97_v13  ;;  %vm103_vm3 = vweird.f32 %v97_v13  ;;  %v107_v20 = vand.u32 2147483647, %v97_v13 }
  0xa5   :  { %v110_v22 = vor.u32 1.1754944e-38, %v109_v19  ;;  %vm108_vm5 = vcmp.eq.f32.partialorder %v107_v20, 8.507059e+37 }
  0xa7   :  { %115 = vrot.lane.b32.xlu0 %v61_v10, %s895_s23 }
  0xa9   :  { %v707_v14 = vpop.eup %706 }
  0xaa   :  { %v99_v15 = vmul.f32 %v707_v14, %v97_v13  ;;  %vm104_vm2 = vweird.f32 %v707_v14 }
  0xab   :  { %vm105_vm4 = vmor %vm103_vm3, %vm104_vm2 }
  0xac   :  { %v100_v16 = vsub.f32 1.0, %v99_v15 }
  0xae   :  { %v101_v17 = vmul.f32 %v707_v14, %v100_v16 }
  0xb0   :  { %v102_v18 = vadd.f32 %v707_v14, %v101_v17 }
  0xb2   :  { %v106_v21 = vsel %vm105_vm4, %v707_v14, %v102_v18 }
  0xb3   :  { %v111_v24 = vsel %vm108_vm5, %v110_v22, %v106_v21 }
 0x111   :  { %v121_v23 = vpop.permute.xlu0 %120 }
 0x112   :  { %v123_v25 = vmul.f32 %v121_v23, %v111_v24 }
 0x114   :  { %125 = vrot.lane.b32.xlu1 %v123_v25, %s895_s23 }
 0x119   :  { %v116_v26 = vpop.permute.xlu0 %115 }
 0x11a   :  { %v118_v27 = vmul.f32 %v116_v26, %v111_v24 }
 0x186   :  { %v126_v28 = vpop.permute.xlu1 %125 }
 0x187   :  { %v128_v29 = vadd.f32 %v126_v28, %v118_v27  ;;  %v274_v27 = vld [vmem:[#allocation4 + $0x6] sm:$0x3] }
 0x189   :  { %708 = vtanh.f32 %v128_v29 }
 0x18f   :  { %v709_v30 = vpop.eup %708 }
 0x190   :  { %131 = vrot.lane.b32.xlu1 %v709_v30, %s895_s23 }
 0x202   :  { %v132_v31 = vpop.permute.xlu1 %131 }
 0x203   :  { %v948_v32 = vmul.f32 %v132_v31, %v111_v24 }
 0x205   :  { %v143_v33 = vpack.c.bf16 %v948_v32, %v948_v32 }
 0x207   :  { %145 = vrot.lane.b32.xlu2 %v143_v33, %s898_s27 }
 0x261   :  { %v146_v34 = vpop.permute.xlu2 %145 }
 0x262   :  { %675 = vmatmul.msk.bf16.vlgmr.msra.gmra.mxu1 %vm76_vm1, %v146_v34 }
 0x2df   :  { %v159_v36 = vpop.f32.mrf.mxu1 }
 0x2e0   :  { %v163_v37 = vadd.f32 %v159_v36, %v142_v35 }
 0x2e2   :  { %710 = vtanh.f32 %v163_v37  ;;  %v676_v40 = vmul.f32 -1.442695, %v163_v37 }
 0x2e4   :  { %712 = vpow2.f32 %v676_v40 }
 0x2e7   :  { %v161_v38 = vpop.f32.mrf.mxu1 }
 0x2e8   :  { %v711_v39 = vpop.eup %710 }
 0x2e9   :  { %186 = vrot.lane.b32.xlu2 %v711_v39, %s895_s23 }
 0x2ea   :  { %v713_v41 = vpop.eup %712 }
 0x2eb   :  { %v167_v42 = vadd.f32 1.0, %v713_v41 }
 0x2ed   :  { %714 = vrcp.f32 %v167_v42  ;;  %v179_v48 = vand.u32 2147483648, %v167_v42  ;;  %vm173_vm7 = vweird.f32 %v167_v42  ;;  %v177_v49 = vand.u32 2147483647, %v167_v42 }
 0x2ef   :  { %v180_v51 = vor.u32 1.1754944e-38, %v179_v48  ;;  %vm178_vm9 = vcmp.eq.f32.partialorder %v177_v49, 8.507059e+37 }
 0x2f3   :  { %v715_v43 = vpop.eup %714 }
 0x2f4   :  { %v169_v44 = vmul.f32 %v715_v43, %v167_v42  ;;  %vm174_vm6 = vweird.f32 %v715_v43 }
 0x2f5   :  { %vm175_vm8 = vmor %vm173_vm7, %vm174_vm6 }
 0x2f6   :  { %v170_v45 = vsub.f32 1.0, %v169_v44 }
 0x2f8   :  { %v171_v46 = vmul.f32 %v715_v43, %v170_v45 }
 0x2fa   :  { %v172_v47 = vadd.f32 %v715_v43, %v171_v46 }
 0x2fc   :  { %v176_v50 = vsel %vm175_vm8, %v715_v43, %v172_v47 }
 0x2fd   :  { %v181_v53 = vsel %vm178_vm9, %v180_v51, %v176_v50 }
 0x2fe   :  { %v184_v55 = vmul.f32 %v181_v53, %v128_v29 }
 0x343   :  { %v187_v52 = vpop.permute.xlu2 %186 }
 0x344   :  { %v189_v54 = vmul.f32 %v187_v52, %v181_v53 }
 0x346   :  { %191 = vrot.lane.b32.xlu0 %v189_v54, %s895_s23 }
 0x3b8   :  { %v192_v56 = vpop.permute.xlu0 %191 }
 0x3b9   :  { %v194_v57 = vadd.f32 %v192_v56, %v184_v55  ;;  %v340_v56 = vld [vmem:[#allocation4 + $0x8] sm:$0x3] }
 0x3bb   :  { %716 = vtanh.f32 %v194_v57 }
 0x3c1   :  { %v717_v58 = vpop.eup %716 }
 0x3c2   :  { %197 = vrot.lane.b32.xlu1 %v717_v58, %s895_s23 }
 0x434   :  { %v198_v59 = vpop.permute.xlu1 %197 }
 0x435   :  { %v957_v60 = vmul.f32 %v198_v59, %v181_v53 }
 0x437   :  { %v209_v61 = vpack.c.bf16 %v957_v60, %v957_v60 }
 0x439   :  { %211 = vrot.lane.b32.xlu2 %v209_v61, %s898_s27 }
 0x493   :  { %v212_v62 = vpop.permute.xlu2 %211 }
 0x494   :  { %677 = vmatmul.msk.bf16.vlgmr.msra.gmra.mxu2 %vm76_vm1, %v212_v62 }
 0x517   :  { %v225_v0 = vpop.f32.mrf.mxu2 }
 0x518   :  { %v229_v1 = vadd.f32 %v225_v0, %v208_v63 }
 0x51a   :  { %718 = vtanh.f32 %v229_v1  ;;  %v678_v4 = vmul.f32 -1.442695, %v229_v1 }
 0x51c   :  { %720 = vpow2.f32 %v678_v4 }
 0x51f   :  { %v227_v2 = vpop.f32.mrf.mxu2 }
 0x520   :  { %v719_v3 = vpop.eup %718 }
 0x521   :  { %252 = vrot.lane.b32.xlu0 %v719_v3, %s895_s23 }
 0x522   :  { %v721_v5 = vpop.eup %720 }
 0x523   :  { %v233_v6 = vadd.f32 1.0, %v721_v5 }
 0x525   :  { %722 = vrcp.f32 %v233_v6  ;;  %v245_v12 = vand.u32 2147483648, %v233_v6  ;;  %vm239_vm11 = vweird.f32 %v233_v6  ;;  %v243_v13 = vand.u32 2147483647, %v233_v6 }
 0x527   :  { %v246_v15 = vor.u32 1.1754944e-38, %v245_v12  ;;  %vm244_vm13 = vcmp.eq.f32.partialorder %v243_v13, 8.507059e+37 }
 0x52b   :  { %v723_v7 = vpop.eup %722 }
 0x52c   :  { %v235_v8 = vmul.f32 %v723_v7, %v233_v6  ;;  %vm240_vm10 = vweird.f32 %v723_v7 }
 0x52d   :  { %vm241_vm12 = vmor %vm239_vm11, %vm240_vm10 }
 0x52e   :  { %v236_v9 = vsub.f32 1.0, %v235_v8 }
 0x530   :  { %v237_v10 = vmul.f32 %v723_v7, %v236_v9 }
 0x532   :  { %v238_v11 = vadd.f32 %v723_v7, %v237_v10 }
 0x534   :  { %v242_v14 = vsel %vm241_vm12, %v723_v7, %v238_v11 }
 0x535   :  { %v247_v17 = vsel %vm244_vm13, %v246_v15, %v242_v14 }
 0x536   :  { %v250_v19 = vmul.f32 %v247_v17, %v194_v57 }
 0x593   :  { %v253_v16 = vpop.permute.xlu0 %252 }
 0x594   :  { %v255_v18 = vmul.f32 %v253_v16, %v247_v17 }
 0x596   :  { %257 = vrot.lane.b32.xlu1 %v255_v18, %s895_s23 }
 0x608   :  { %v258_v20 = vpop.permute.xlu1 %257 }
 0x609   :  { %v260_v21 = vadd.f32 %v258_v20, %v250_v19 }
 0x60b   :  { %724 = vtanh.f32 %v260_v21 }
 0x611   :  { %v725_v22 = vpop.eup %724 }
 0x612   :  { %263 = vrot.lane.b32.xlu2 %v725_v22, %s895_s23 }
 0x66c   :  { %v264_v23 = vpop.permute.xlu2 %263 }
 0x66d   :  { %v966_v24 = vmul.f32 %v264_v23, %v247_v17 }
 0x66f   :  { %v275_v25 = vpack.c.bf16 %v966_v24, %v966_v24 }
 0x671   :  { %277 = vrot.lane.b32.xlu0 %v275_v25, %s898_s27 }
 0x6e3   :  { %v278_v26 = vpop.permute.xlu0 %277 }
 0x6e4   :  { %679 = vmatmul.msk.bf16.vlgmr.msra.gmra.mxu3 %vm76_vm1, %v278_v26 }
 0x767   :  { %v291_v28 = vpop.f32.mrf.mxu3 }
 0x768   :  { %v295_v29 = vadd.f32 %v291_v28, %v274_v27 }
 0x76a   :  { %726 = vtanh.f32 %v295_v29  ;;  %v680_v33 = vmul.f32 -1.442695, %v295_v29 }
 0x76c   :  { %728 = vpow2.f32 %v680_v33 }
 0x76f   :  { %v293_v30 = vpop.f32.mrf.mxu3 }
 0x770   :  { %v727_v31 = vpop.eup %726 }
 0x771   :  { %318 = vrot.lane.b32.xlu1 %v727_v31, %s895_s23 }
 0x772   :  { %v729_v34 = vpop.eup %728 }
 0x773   :  { %v299_v35 = vadd.f32 1.0, %v729_v34 }
 0x775   :  { %730 = vrcp.f32 %v299_v35  ;;  %v311_v41 = vand.u32 2147483648, %v299_v35  ;;  %vm305_vm15 = vweird.f32 %v299_v35  ;;  %v309_v42 = vand.u32 2147483647, %v299_v35 }
 0x777   :  { %v312_v44 = vor.u32 1.1754944e-38, %v311_v41  ;;  %vm310_vm3 = vcmp.eq.f32.partialorder %v309_v42, 8.507059e+37 }
 0x77b   :  { %v731_v36 = vpop.eup %730 }
 0x77c   :  { %v301_v37 = vmul.f32 %v731_v36, %v299_v35  ;;  %vm306_vm14 = vweird.f32 %v731_v36 }
 0x77d   :  { %vm307_vm2 = vmor %vm305_vm15, %vm306_vm14 }
 0x77e   :  { %v302_v38 = vsub.f32 1.0, %v301_v37 }
 0x780   :  { %v303_v39 = vmul.f32 %v731_v36, %v302_v38 }
 0x782   :  { %v304_v40 = vadd.f32 %v731_v36, %v303_v39 }
 0x784   :  { %v308_v43 = vsel %vm307_vm2, %v731_v36, %v304_v40 }
 0x785   :  { %v313_v46 = vsel %vm310_vm3, %v312_v44, %v308_v43 }
 0x786   :  { %v316_v48 = vmul.f32 %v313_v46, %v260_v21  ;;  %v406_v21 = vld [vmem:[#allocation4 + $0xa] sm:$0x3] }
 0x7e3   :  { %v319_v45 = vpop.permute.xlu1 %318 }
 0x7e4   :  { %v321_v47 = vmul.f32 %v319_v45, %v313_v46 }
 0x7e6   :  { %323 = vrot.lane.b32.xlu2 %v321_v47, %s895_s23 }
 0x840   :  { %v324_v49 = vpop.permute.xlu2 %323 }
 0x841   :  { %v326_v50 = vadd.f32 %v324_v49, %v316_v48 }
 0x843   :  { %732 = vtanh.f32 %v326_v50 }
 0x849   :  { %v733_v51 = vpop.eup %732 }
 0x84a   :  { %329 = vrot.lane.b32.xlu0 %v733_v51, %s895_s23  ;;  %v472_v51 = vld [vmem:[#allocation4 + $0xc] sm:$0x3] }
 0x8bc   :  { %v330_v52 = vpop.permute.xlu0 %329 }
 0x8bd   :  { %v975_v53 = vmul.f32 %v330_v52, %v313_v46 }
 0x8bf   :  { %v341_v54 = vpack.c.bf16 %v975_v53, %v975_v53 }
 0x8c1   :  { %343 = vrot.lane.b32.xlu1 %v341_v54, %s898_s27 }
 0x933   :  { %v344_v55 = vpop.permute.xlu1 %343 }
 0x934   :  { %681 = vmatmul.msk.bf16.vlgmr.msrb.gmra.mxu0 %vm76_vm1, %v344_v55 }
 0x9b1   :  { %v357_v57 = vpop.f32.mrf.mxu0 }
 0x9b2   :  { %v361_v58 = vadd.f32 %v357_v57, %v340_v56 }
 0x9b4   :  { %734 = vtanh.f32 %v361_v58  ;;  %v682_v62 = vmul.f32 -1.442695, %v361_v58 }
 0x9b6   :  { %736 = vpow2.f32 %v682_v62 }
 0x9b9   :  { %v359_v59 = vpop.f32.mrf.mxu0 }
 0x9ba   :  { %v735_v61 = vpop.eup %734 }
 0x9bb   :  { %384 = vrot.lane.b32.xlu2 %v735_v61, %s895_s23 }
 0x9bc   :  { %v737_v63 = vpop.eup %736 }
 0x9bd   :  { %v365_v0 = vadd.f32 1.0, %v737_v63 }
 0x9bf   :  { %738 = vrcp.f32 %v365_v0  ;;  %v377_v6 = vand.u32 2147483648, %v365_v0  ;;  %vm371_vm5 = vweird.f32 %v365_v0  ;;  %v375_v7 = vand.u32 2147483647, %v365_v0 }
 0x9c1   :  { %v378_v9 = vor.u32 1.1754944e-38, %v377_v6  ;;  %vm376_vm7 = vcmp.eq.f32.partialorder %v375_v7, 8.507059e+37 }
 0x9c5   :  { %v739_v1 = vpop.eup %738 }
 0x9c6   :  { %v367_v2 = vmul.f32 %v739_v1, %v365_v0  ;;  %vm372_vm4 = vweird.f32 %v739_v1 }
 0x9c7   :  { %vm373_vm6 = vmor %vm371_vm5, %vm372_vm4 }
 0x9c8   :  { %v368_v3 = vsub.f32 1.0, %v367_v2 }
 0x9ca   :  { %v369_v4 = vmul.f32 %v739_v1, %v368_v3 }
 0x9cc   :  { %v370_v5 = vadd.f32 %v739_v1, %v369_v4 }
 0x9ce   :  { %v374_v8 = vsel %vm373_vm6, %v739_v1, %v370_v5 }
 0x9cf   :  { %v379_v11 = vsel %vm376_vm7, %v378_v9, %v374_v8 }
 0x9d0   :  { %v382_v13 = vmul.f32 %v379_v11, %v326_v50 }
 0xa15   :  { %v385_v10 = vpop.permute.xlu2 %384 }
 0xa16   :  { %v387_v12 = vmul.f32 %v385_v10, %v379_v11 }
 0xa18   :  { %389 = vrot.lane.b32.xlu0 %v387_v12, %s895_s23 }
 0xa8a   :  { %v390_v14 = vpop.permute.xlu0 %389 }
 0xa8b   :  { %v392_v15 = vadd.f32 %v390_v14, %v382_v13 }
 0xa8d   :  { %740 = vtanh.f32 %v392_v15 }
 0xa93   :  { %v741_v16 = vpop.eup %740 }
 0xa94   :  { %395 = vrot.lane.b32.xlu1 %v741_v16, %s895_s23 }
 0xb06   :  { %v396_v17 = vpop.permute.xlu1 %395 }
 0xb07   :  { %v984_v18 = vmul.f32 %v396_v17, %v379_v11  ;;  %v538_v17 = vld [vmem:[#allocation4 + $0xe] sm:$0x3] }
 0xb09   :  { %v407_v19 = vpack.c.bf16 %v984_v18, %v984_v18 }
 0xb0b   :  { %409 = vrot.lane.b32.xlu2 %v407_v19, %s898_s27 }
 0xb65   :  { %v410_v20 = vpop.permute.xlu2 %409 }
 0xb66   :  { %683 = vmatmul.msk.bf16.vlgmr.msrb.gmra.mxu1 %vm76_vm1, %v410_v20 }
 0xbe3   :  { %v423_v22 = vpop.f32.mrf.mxu1 }
 0xbe4   :  { %v427_v23 = vadd.f32 %v423_v22, %v406_v21 }
 0xbe6   :  { %742 = vtanh.f32 %v427_v23  ;;  %v684_v27 = vmul.f32 -1.442695, %v427_v23 }
 0xbe8   :  { %744 = vpow2.f32 %v684_v27 }
 0xbeb   :  { %v425_v25 = vpop.f32.mrf.mxu1 }
 0xbec   :  { %v743_v26 = vpop.eup %742 }
 0xbed   :  { %450 = vrot.lane.b32.xlu0 %v743_v26, %s895_s23 }
 0xbee   :  { %v745_v28 = vpop.eup %744 }
 0xbef   :  { %v431_v29 = vadd.f32 1.0, %v745_v28 }
 0xbf1   :  { %746 = vrcp.f32 %v431_v29  ;;  %v443_v36 = vand.u32 2147483648, %v431_v29  ;;  %vm437_vm9 = vweird.f32 %v431_v29  ;;  %v441_v37 = vand.u32 2147483647, %v431_v29 }
 0xbf3   :  { %v444_v39 = vor.u32 1.1754944e-38, %v443_v36  ;;  %vm442_vm11 = vcmp.eq.f32.partialorder %v441_v37, 8.507059e+37 }
 0xbf7   :  { %v747_v30 = vpop.eup %746 }
 0xbf8   :  { %v433_v31 = vmul.f32 %v747_v30, %v431_v29  ;;  %vm438_vm8 = vweird.f32 %v747_v30 }
 0xbf9   :  { %vm439_vm10 = vmor %vm437_vm9, %vm438_vm8 }
 0xbfa   :  { %v434_v33 = vsub.f32 1.0, %v433_v31 }
 0xbfc   :  { %v435_v34 = vmul.f32 %v747_v30, %v434_v33 }
 0xbfe   :  { %v436_v35 = vadd.f32 %v747_v30, %v435_v34 }
 0xc00   :  { %v440_v38 = vsel %vm439_vm10, %v747_v30, %v436_v35 }
 0xc01   :  { %v445_v41 = vsel %vm442_vm11, %v444_v39, %v440_v38 }
 0xc02   :  { %v448_v43 = vmul.f32 %v445_v41, %v392_v15 }
 0xc5f   :  { %v451_v40 = vpop.permute.xlu0 %450 }
 0xc60   :  { %v453_v42 = vmul.f32 %v451_v40, %v445_v41 }
 0xc62   :  { %455 = vrot.lane.b32.xlu1 %v453_v42, %s895_s23 }
 0xcd4   :  { %v456_v44 = vpop.permute.xlu1 %455 }
 0xcd5   :  { %v458_v45 = vadd.f32 %v456_v44, %v448_v43 }
 0xcd7   :  { %748 = vtanh.f32 %v458_v45 }
 0xcdd   :  { %v749_v46 = vpop.eup %748 }
 0xcde   :  { %461 = vrot.lane.b32.xlu2 %v749_v46, %s895_s23 }
 0xd38   :  { %v462_v47 = vpop.permute.xlu2 %461 }
 0xd39   :  { %v993_v48 = vmul.f32 %v462_v47, %v445_v41 }
 0xd3b   :  { %v473_v49 = vpack.c.bf16 %v993_v48, %v993_v48 }
 0xd3d   :  { %475 = vrot.lane.b32.xlu0 %v473_v49, %s898_s27 }
 0xdaf   :  { %v476_v50 = vpop.permute.xlu0 %475 }
 0xdb0   :  { %685 = vmatmul.msk.bf16.vlgmr.msrb.gmra.mxu2 %vm76_vm1, %v476_v50 }
 0xe33   :  { %v489_v52 = vpop.f32.mrf.mxu2 }
 0xe34   :  { %v493_v54 = vadd.f32 %v489_v52, %v472_v51 }
 0xe36   :  { %750 = vtanh.f32 %v493_v54  ;;  %v686_v57 = vmul.f32 -1.442695, %v493_v54 }
 0xe38   :  { %752 = vpow2.f32 %v686_v57 }
 0xe3b   :  { %v491_v55 = vpop.f32.mrf.mxu2 }
 0xe3c   :  { %v751_v56 = vpop.eup %750 }
 0xe3d   :  { %516 = vrot.lane.b32.xlu1 %v751_v56, %s895_s23 }
 0xe3e   :  { %v753_v58 = vpop.eup %752 }
 0xe3f   :  { %v497_v59 = vadd.f32 1.0, %v753_v58 }
 0xe41   :  { %754 = vrcp.f32 %v497_v59  ;;  %v509_v2 = vand.u32 2147483648, %v497_v59  ;;  %vm503_vm13 = vweird.f32 %v497_v59  ;;  %v507_v3 = vand.u32 2147483647, %v497_v59 }
 0xe43   :  { %v510_v5 = vor.u32 1.1754944e-38, %v509_v2  ;;  %vm508_vm15 = vcmp.eq.f32.partialorder %v507_v3, 8.507059e+37 }
 0xe47   :  { %v755_v61 = vpop.eup %754 }
 0xe48   :  { %v499_v62 = vmul.f32 %v755_v61, %v497_v59  ;;  %vm504_vm12 = vweird.f32 %v755_v61 }
 0xe49   :  { %vm505_vm14 = vmor %vm503_vm13, %vm504_vm12 }
 0xe4a   :  { %v500_v63 = vsub.f32 1.0, %v499_v62 }
 0xe4c   :  { %v501_v0 = vmul.f32 %v755_v61, %v500_v63 }
 0xe4e   :  { %v502_v1 = vadd.f32 %v755_v61, %v501_v0 }
 0xe50   :  { %v506_v4 = vsel %vm505_vm14, %v755_v61, %v502_v1 }
 0xe51   :  { %v511_v7 = vsel %vm508_vm15, %v510_v5, %v506_v4 }
 0xe52   :  { %v514_v9 = vmul.f32 %v511_v7, %v458_v45 }
 0xeaf   :  { %v517_v6 = vpop.permute.xlu1 %516 }
 0xeb0   :  { %v519_v8 = vmul.f32 %v517_v6, %v511_v7 }
 0xeb2   :  { %521 = vrot.lane.b32.xlu2 %v519_v8, %s895_s23 }
 0xf0c   :  { %v522_v10 = vpop.permute.xlu2 %521 }
 0xf0d   :  { %v524_v11 = vadd.f32 %v522_v10, %v514_v9 }
 0xf0f   :  { %756 = vtanh.f32 %v524_v11 }
 0xf15   :  { %v757_v12 = vpop.eup %756 }
 0xf16   :  { %527 = vrot.lane.b32.xlu0 %v757_v12, %s895_s23 }
 0xf88   :  { %v528_v13 = vpop.permute.xlu0 %527 }
 0xf89   :  { %v530_v14 = vmul.f32 %v528_v13, %v511_v7 }
 0xf8b   :  { %v539_v15 = vpack.c.bf16 %v530_v14, %v530_v14 }
 0xf8d   :  { %541 = vrot.lane.b32.xlu1 %v539_v15, %s898_s27 }
 0xfff   :  { %v542_v16 = vpop.permute.xlu1 %541 }
0x1000   :  { %687 = vmatmul.msk.bf16.vlgmr.msrb.gmra.mxu3 %vm76_vm1, %v542_v16 }
0x1083   :  { %v555_v19 = vpop.f32.mrf.mxu3 }
0x1084   :  { %v559_v20 = vadd.f32 %v555_v19, %v538_v17 }
0x1086   :  { %758 = vtanh.f32 %v559_v20  ;;  %v688_v23 = vmul.f32 -1.442695, %v559_v20 }
0x1088   :  { %760 = vpow2.f32 %v688_v23 }
0x108b   :  { %v557_v21 = vpop.f32.mrf.mxu3 }
0x108c   :  { %v759_v22 = vpop.eup %758 }
0x108d   :  { %582 = vrot.lane.b32.xlu2 %v759_v22, %s895_s23 }
0x108e   :  { %v761_v25 = vpop.eup %760 }
0x108f   :  { %v563_v26 = vadd.f32 1.0, %v761_v25 }
0x1091   :  { %762 = vrcp.f32 %v563_v26  ;;  %v575_v33 = vand.u32 2147483648, %v563_v26  ;;  %vm569_vm2 = vweird.f32 %v563_v26  ;;  %v573_v34 = vand.u32 2147483647, %v563_v26 }
0x1093   :  { %v576_v36 = vor.u32 1.1754944e-38, %v575_v33  ;;  %vm574_vm4 = vcmp.eq.f32.partialorder %v573_v34, 8.507059e+37 }
0x1095   :  { %268 = vrot.lane.b32.xlu2 %v966_v24, %s898_s27 }
0x1097   :  { %v763_v27 = vpop.eup %762 }
0x1098   :  { %v565_v28 = vmul.f32 %v763_v27, %v563_v26  ;;  %vm570_vm1 = vweird.f32 %v763_v27 }
0x1099   :  { %vm571_vm3 = vmor %vm569_vm2, %vm570_vm1 }
0x109a   :  { %v566_v29 = vsub.f32 1.0, %v565_v28 }
0x109c   :  { %v567_v30 = vmul.f32 %v763_v27, %v566_v29 }
0x109e   :  { %v568_v31 = vadd.f32 %v763_v27, %v567_v30 }
0x10a0   :  { %v572_v35 = vsel %vm571_vm3, %v763_v27, %v568_v31 }
0x10a1   :  { %v577_v24 = vsel %vm574_vm4, %v576_v36, %v572_v35 }
0x10a2   :  { %v580_v40 = vmul.f32 %v577_v24, %v524_v11 }
0x10e7   :  { %v583_v37 = vpop.permute.xlu2 %582 }
0x10e8   :  { %v585_v38 = vmul.f32 %v583_v37, %v577_v24 }
0x10ea   :  { %587 = vrot.lane.b32.xlu0 %v585_v38, %s895_s23 }
0x10ef   :  { %v269_v39 = vpop.permute.xlu2 %268 }
0x10f0   :  { %272 = vst.msk [vmem:[#allocation9 + $0x4] sm:$0x3] %vm53_vm0, %v269_v39 }
0x10f2   :  { %136 = vrot.lane.b32.xlu0 %v948_v32, %s898_s27 }
0x10fa   :  { %334 = vrot.lane.b32.xlu0 %v975_v53, %s898_s27 }
0x1102   :  { %532 = vrot.lane.b32.xlu0 %v530_v14, %s898_s27 }
0x115c   :  { %v588_v41 = vpop.permute.xlu0 %587 }
0x115d   :  { %v590_v42 = vadd.f32 %v588_v41, %v580_v40 }
0x115f   :  { %764 = vtanh.f32 %v590_v42 }
0x1164   :  { %v137_v43 = vpop.permute.xlu0 %136 }
0x1165   :  { %v765_v44 = vpop.eup %764  ;;  %140 = vst.msk [vmem:[#allocation9] sm:$0x3] %vm53_vm0, %v137_v43 }
0x1166   :  { %593 = vrot.lane.b32.xlu1 %v765_v44, %s895_s23 }
0x116c   :  { %v335_v45 = vpop.permute.xlu0 %334 }
0x116d   :  { %338 = vst.msk [vmem:[#allocation9 + $0x6] sm:$0x3] %vm53_vm0, %v335_v45 }
0x116e   :  { %202 = vrot.lane.b32.xlu1 %v957_v60, %s898_s27 }
0x1174   :  { %v533_v32 = vpop.permute.xlu0 %532 }
0x1175   :  { %536 = vst.msk [vmem:[#allocation9 + $0xc] sm:$0x3] %vm53_vm0, %v533_v32 }
0x1176   :  { %400 = vrot.lane.b32.xlu1 %v984_v18, %s898_s27 }
0x117e   :  { %605 = vrot.lane.b32.xlu1 %v590_v42, %s901_s1 }
0x11d8   :  { %v594_v53 = vpop.permute.xlu1 %593 }
0x11d9   :  { %v596_v46 = vmul.f32 %v594_v53, %v577_v24 }
0x11db   :  { %598 = vrot.lane.b32.xlu2 %v596_v46, %s898_s27 }
0x11e0   :  { %v203_v47 = vpop.permute.xlu1 %202 }
0x11e1   :  { %206 = vst.msk [vmem:[#allocation9 + $0x2] sm:$0x3] %vm53_vm0, %v203_v47 }
0x11e3   :  { %466 = vrot.lane.b32.xlu2 %v993_v48, %s898_s27 }
0x11e8   :  { %v401_v49 = vpop.permute.xlu1 %400 }
0x11e9   :  { %404 = vst.msk [vmem:[#allocation9 + $0x8] sm:$0x3] %vm53_vm0, %v401_v49 }
0x11f0   :  { %v606_v60 = vpop.permute.xlu1 %605 }
0x11f1   :  { %608 = vst.msk [vmem:[#allocation3] sm:$0x3] %vm53_vm0, %v606_v60 }
0x11f2   :  { %613 = vst.msk [vmem:[#allocation12] sm:$0x3] %vm53_vm0, %v606_v60 }
0x1235   :  { %v599_v18 = vpop.permute.xlu2 %598 }
0x1236   :  { %602 = vst.msk [vmem:[#allocation9 + $0xe] sm:$0x3] %vm53_vm0, %v599_v18 }
0x1237   :  { %603 = vst.msk [vmem:[#allocation2] sm:$0x3] %vm53_vm0, %v599_v18 }
0x1238   :  { %612 = vst.msk [vmem:[#allocation10] sm:$0x3] %vm53_vm0, %v599_v18 }
0x1239   :  { %637 = dma.vmem_to_hbm [thread:$0]  %s633_s29, 32, %s635_s6, [#allocation11]  }
0x123a   :  { %648 = dma.vmem_to_hbm [thread:$0]  %s644_s8, 32, %s646_s11, [#allocation11]  }
0x123d   :  { %v467_v48 = vpop.permute.xlu2 %466 }
0x123e   :  { %470 = vst.msk [vmem:[#allocation9 + $0xa] sm:$0x3] %vm53_vm0, %v467_v48 }
0x123f   :  { %626 = dma.vmem_to_hbm [thread:$0]  %s619_s13, 256, %s621_s15, [#allocation6], %s895_s23, %s895_s23, %s896_s24  }
0x1240   :  { %890 = dma.done.wait [#allocation6], 256  }
0x1241   :  { %891 = vsyncadd [#allocation6], 4294967040 }
0x1242   :  { %892 = dma.done.wait [#allocation11], 64  }
0x1243   :  { %893 = vsyncadd [#allocation11], 4294967232 }
0x1244   :  { %661 = vsyncpa [#allocation5], 1 }
0x1245   :  { %662 = vsyncpa [#allocation8], 1 }
0x1246   :  { %663 = vsyncpa [#allocation6], 1 }
0x1247   :  { %664 = vsyncpa [#allocation11], 1 }

</bundles_post_ra>
